<compile_context>
chip_gen: v7x
topology: tpu7x:2x2x1
jax: 0.10.0
libtpu: 0.0.40
codegen_flags: <defaults>
</compile_context>

<pallas_src>
import jax
import jax.numpy as jnp
from jax.experimental import pallas as pl
from jax.experimental.pallas import tpu as pltpu


_IN, _HID, _OUT = 2, 3, 1


def _mlp_kernel(p_ref, x_ref, o_ref):
    """2->3->1 MLP on one (2, TB) batch tile, batch on the lane axis.

    p_ref (SMEM f32[13], scalar-prefetched):
      [0:3]  fc1 weight row 0 (normalization folded in)
      [3:6]  fc1 weight row 1 (normalization folded in)
      [6:9]  fc1 bias        (normalization folded in)
      [9:12] fc2 weight
      [12]   fc2 bias
    x_ref : (2, TB) VMEM  -- input features, batch on lanes
    o_ref : (1, TB) VMEM  -- output, batch on lanes (lane-dense store)
    """
    x0 = x_ref[0:1, :]  # (1, TB)
    x1 = x_ref[1:2, :]  # (1, TB)

    y = p_ref[12]  # fc2 bias (scalar, broadcast below)
    for j in range(_HID):  # static unroll, HID == 3
        hj = jax.nn.sigmoid(
            x0 * p_ref[j] + x1 * p_ref[_HID + j] + p_ref[2 * _HID + j]
        )
        y = y + hj * p_ref[3 * _HID + j]
    o_ref[...] = jax.nn.sigmoid(y)


def _round_up(n, m):
    return ((n + m - 1) // m) * m


def net_forward(x, w1, b1, w2, b2, *, avg=0.0, std=1.0, batch_tile=1024):
    """Pallas TPU implementation of Net.forward.

    x : (B, 2) float32
    w1: (2, 3) float32   (pre-transposed vs. PyTorch's (3, 2))
    b1: (3,)   float32
    w2: (3, 1) float32   (pre-transposed vs. PyTorch's (1, 3))
    b2: (1,)   float32
    returns: (B, 1) float32
    """
    x = x.astype(jnp.float32)
    w1 = w1.astype(jnp.float32)
    b1 = b1.astype(jnp.float32)
    w2 = w2.astype(jnp.float32)
    b2 = b2.astype(jnp.float32)

    B = x.shape[0]

    # Fold the input normalization (x - avg) / std into fc1 once (6 weights):
    #   ((x - avg)/std) @ w1 + b1 == x @ (w1/std) + (b1 - (avg/std) @ w1)
    avg_v = jnp.broadcast_to(jnp.asarray(avg, jnp.float32), (_IN,))
    std_v = jnp.broadcast_to(jnp.asarray(std, jnp.float32), (_IN,))
    w1_eff = w1 / std_v[:, None]
    b1_eff = b1 - (avg_v / std_v) @ w1

    # Pack all 13 real parameters into one small SMEM vector.
    params = jnp.concatenate(
        [w1_eff.reshape(-1), b1_eff.reshape(-1), w2.reshape(-1), b2.reshape(-1)]
    )

    # Batch on lanes; tile the batch so the pipeline double-buffers and VMEM
    # stays tiny regardless of B.
    tb = min(batch_tile, _round_up(B, 128))
    b_pad = _round_up(B, tb)

    xt = jnp.transpose(x)  # (2, B)
    if b_pad != B:
        xt = jnp.pad(xt, ((0, 0), (0, b_pad - B)))

    out_t = pl.pallas_call(
        _mlp_kernel,
        out_shape=jax.ShapeDtypeStruct((_OUT, b_pad), jnp.float32),
        grid_spec=pltpu.PrefetchScalarGridSpec(
            num_scalar_prefetch=1,
            grid=(b_pad // tb,),
            in_specs=[pl.BlockSpec((_IN, tb), lambda i, p: (0, i))],
            out_specs=pl.BlockSpec((_OUT, tb), lambda i, p: (0, i)),
        ),
        compiler_params=pltpu.CompilerParams(
            dimension_semantics=("parallel",),
        ),
    )(params, xt)

    return out_t[:, :B].T


def net_forward_ref(x, w1, b1, w2, b2, *, avg=0.0, std=1.0):
    x = (x - avg) / std
    h = jax.nn.sigmoid(x @ w1 + b1)
    return jax.nn.sigmoid(h @ w2 + b2)


if __name__ == "__main__":
    key = jax.random.PRNGKey(0)
    kx, k1, kb1, k2, kb2 = jax.random.split(key, 5)

    B = 8
    x = jax.random.normal(kx, (B, _IN), dtype=jnp.float32)
    w1 = jax.random.uniform(k1, (_IN, _HID), jnp.float32, -0.5, 0.5)
    b1 = jax.random.uniform(kb1, (_HID,), jnp.float32, -0.5, 0.5)
    w2 = jax.random.uniform(k2, (_HID, _OUT), jnp.float32, -0.5, 0.5)
    b2 = jax.random.uniform(kb2, (_OUT,), jnp.float32, -0.5, 0.5)

    avg, std = 0.25, 1.5  # exercise the normalization fold

    out = net_forward(x, w1, b1, w2, b2, avg=avg, std=std)
    out = jax.block_until_ready(out)

    ref = net_forward_ref(x, w1, b1, w2, b2, avg=avg, std=std)
    assert out.shape == (B, _OUT), out.shape
    assert jnp.allclose(out, ref, atol=1e-5, rtol=1e-5), (out, ref)

    print("KERNEL_OK")
</pallas_src>

<mosaic_0001>
module attributes {stable_mosaic.version = 11 : i64} {
  func.func @_mlp_kernel(%arg0: i32, %arg1: memref<13xf32, #tpu.memory_space<smem>>, %arg2: memref<2x128xf32, #tpu.memory_space<vmem>>, %arg3: memref<1x128xf32, #tpu.memory_space<vmem>>) attributes {dimension_semantics = [#tpu.dimension_semantics<parallel>], iteration_bounds = array<i64: 1>, scalar_prefetch = 1 : i64, scratch_operands = 0 : i64, tpu.core_type = #tpu.core_type<tc>, window_params = [{transform_indices = @transform_0, window_bounds = array<i64: 2, 128>}, {transform_indices = @transform_1, window_bounds = array<i64: 1, 128>}]} {
    %c0 = arith.constant 0 : index
    %c0_0 = arith.constant 0 : index
    %0 = vector.load %arg2[%c0, %c0_0] : memref<2x128xf32, #tpu.memory_space<vmem>>, vector<1x128xf32>
    %c1 = arith.constant 1 : index
    %c0_1 = arith.constant 0 : index
    %1 = vector.load %arg2[%c1, %c0_1] : memref<2x128xf32, #tpu.memory_space<vmem>>, vector<1x128xf32>
    %c12 = arith.constant 12 : index
    %2 = memref.load %arg1[%c12] : memref<13xf32, #tpu.memory_space<smem>>
    %c0_2 = arith.constant 0 : index
    %3 = memref.load %arg1[%c0_2] : memref<13xf32, #tpu.memory_space<smem>>
    %4 = vector.broadcast %3 : f32 to vector<1x128xf32>
    %5 = arith.mulf %0, %4 : vector<1x128xf32>
    %c3 = arith.constant 3 : index
    %6 = memref.load %arg1[%c3] : memref<13xf32, #tpu.memory_space<smem>>
    %7 = vector.broadcast %6 : f32 to vector<1x128xf32>
    %8 = arith.mulf %1, %7 : vector<1x128xf32>
    %9 = arith.addf %5, %8 : vector<1x128xf32>
    %c6 = arith.constant 6 : index
    %10 = memref.load %arg1[%c6] : memref<13xf32, #tpu.memory_space<smem>>
    %11 = vector.broadcast %10 : f32 to vector<1x128xf32>
    %12 = arith.addf %9, %11 : vector<1x128xf32>
    %13 = arith.negf %12 : vector<1x128xf32>
    %14 = math.exp %13 : vector<1x128xf32>
    %cst = arith.constant 1.000000e+00 : f32
    %15 = vector.broadcast %cst : f32 to vector<1x128xf32>
    %16 = arith.addf %15, %14 : vector<1x128xf32>
    %17 = arith.divf %15, %16 : vector<1x128xf32>
    %c9 = arith.constant 9 : index
    %18 = memref.load %arg1[%c9] : memref<13xf32, #tpu.memory_space<smem>>
    %19 = vector.broadcast %18 : f32 to vector<1x128xf32>
    %20 = arith.mulf %17, %19 : vector<1x128xf32>
    %21 = vector.broadcast %2 : f32 to vector<1x128xf32>
    %22 = arith.addf %21, %20 : vector<1x128xf32>
    %c1_3 = arith.constant 1 : index
    %23 = memref.load %arg1[%c1_3] : memref<13xf32, #tpu.memory_space<smem>>
    %24 = vector.broadcast %23 : f32 to vector<1x128xf32>
    %25 = arith.mulf %0, %24 : vector<1x128xf32>
    %c4 = arith.constant 4 : index
    %26 = memref.load %arg1[%c4] : memref<13xf32, #tpu.memory_space<smem>>
    %27 = vector.broadcast %26 : f32 to vector<1x128xf32>
    %28 = arith.mulf %1, %27 : vector<1x128xf32>
    %29 = arith.addf %25, %28 : vector<1x128xf32>
    %c7 = arith.constant 7 : index
    %30 = memref.load %arg1[%c7] : memref<13xf32, #tpu.memory_space<smem>>
    %31 = vector.broadcast %30 : f32 to vector<1x128xf32>
    %32 = arith.addf %29, %31 : vector<1x128xf32>
    %33 = arith.negf %32 : vector<1x128xf32>
    %34 = math.exp %33 : vector<1x128xf32>
    %cst_4 = arith.constant 1.000000e+00 : f32
    %35 = vector.broadcast %cst_4 : f32 to vector<1x128xf32>
    %36 = arith.addf %35, %34 : vector<1x128xf32>
    %37 = arith.divf %35, %36 : vector<1x128xf32>
    %c10 = arith.constant 10 : index
    %38 = memref.load %arg1[%c10] : memref<13xf32, #tpu.memory_space<smem>>
    %39 = vector.broadcast %38 : f32 to vector<1x128xf32>
    %40 = arith.mulf %37, %39 : vector<1x128xf32>
    %41 = arith.addf %22, %40 : vector<1x128xf32>
    %c2 = arith.constant 2 : index
    %42 = memref.load %arg1[%c2] : memref<13xf32, #tpu.memory_space<smem>>
    %43 = vector.broadcast %42 : f32 to vector<1x128xf32>
    %44 = arith.mulf %0, %43 : vector<1x128xf32>
    %c5 = arith.constant 5 : index
    %45 = memref.load %arg1[%c5] : memref<13xf32, #tpu.memory_space<smem>>
    %46 = vector.broadcast %45 : f32 to vector<1x128xf32>
    %47 = arith.mulf %1, %46 : vector<1x128xf32>
    %48 = arith.addf %44, %47 : vector<1x128xf32>
    %c8 = arith.constant 8 : index
    %49 = memref.load %arg1[%c8] : memref<13xf32, #tpu.memory_space<smem>>
    %50 = vector.broadcast %49 : f32 to vector<1x128xf32>
    %51 = arith.addf %48, %50 : vector<1x128xf32>
    %52 = arith.negf %51 : vector<1x128xf32>
    %53 = math.exp %52 : vector<1x128xf32>
    %cst_5 = arith.constant 1.000000e+00 : f32
    %54 = vector.broadcast %cst_5 : f32 to vector<1x128xf32>
    %55 = arith.addf %54, %53 : vector<1x128xf32>
    %56 = arith.divf %54, %55 : vector<1x128xf32>
    %c11 = arith.constant 11 : index
    %57 = memref.load %arg1[%c11] : memref<13xf32, #tpu.memory_space<smem>>
    %58 = vector.broadcast %57 : f32 to vector<1x128xf32>
    %59 = arith.mulf %56, %58 : vector<1x128xf32>
    %60 = arith.addf %41, %59 : vector<1x128xf32>
    %61 = arith.negf %60 : vector<1x128xf32>
    %62 = math.exp %61 : vector<1x128xf32>
    %cst_6 = arith.constant 1.000000e+00 : f32
    %63 = vector.broadcast %cst_6 : f32 to vector<1x128xf32>
    %64 = arith.addf %63, %62 : vector<1x128xf32>
    %65 = arith.divf %63, %64 : vector<1x128xf32>
    %c0_7 = arith.constant 0 : index
    %c0_8 = arith.constant 0 : index
    %66 = vector.load %arg3[%c0_7, %c0_8] : memref<1x128xf32, #tpu.memory_space<vmem>>, vector<1x128xf32>
    tpu.vector_store %arg3[%c0_7, %c0_8], %65 {strides = array<i32>} : memref<1x128xf32, #tpu.memory_space<vmem>>, vector<1x128xf32>,
    return
  }
  func.func @transform_0(%arg0: i32, %arg1: memref<13xf32, #tpu.memory_space<smem>>) -> (i32, i32) {
    %c0_i32 = arith.constant 0 : i32
    %c0_i32_0 = arith.constant 0 : i32
    return %c0_i32, %arg0 : i32, i32
  }
  func.func @transform_1(%arg0: i32, %arg1: memref<13xf32, #tpu.memory_space<smem>>) -> (i32, i32) {
    %c0_i32 = arith.constant 0 : i32
    %c0_i32_0 = arith.constant 0 : i32
    return %c0_i32, %arg0 : i32, i32
  }
}

</mosaic_0001>

<bundles_post_ra>
// kernel: tpu_custom_call.1
= control target key start
LH: loop header
LB: loop body
LE: loop exit
PB: predicated region body
PF: predicated region fallthrough
CT: control target
= control target key end

     0   :  { %s216_s0 = inlined_call_operand.hbm [shape: f32[13], index: 0, kind: input, shape index: {}]   ;;  %s217_s1 = inlined_call_operand.vmem [shape: f32[2,128], index: 1, kind: input, shape index: {}]   ;;  %s218_s2 = inlined_call_operand.hbm [shape: f32[1,128], index: 2, kind: output, shape index: {}]  }
   0x1   :  { %s133_s11 = scalar_lea.hbm %s216_s0, 16 }
   0x2   :  { %p134_p0 = scmp.ne.s32.totalorder %s216_s0, %s133_s11  ;;  %p137_p1 = scmp.lt.u32.totalorder %s133_s11, %s216_s0 }
   0x4   :  { %p139_p2 = pnand %p137_p1, %p134_p0 }
   0x6   :  { %142 = shalt.err (!%p139_p2)  }
   0x7   :  { %s169_s16 = smov [#allocation3]  }
   0x8   :  { %8 = dma.hbm_to_smem %s216_s0, 16, %s169_s16, [#allocation2] }
   0x9   :  { %165 = dma.done.wait [#allocation2], 16 }
   0xa   :  { %166 = vsyncadd [#allocation2], 4294967280 }
   0xb   :  { %10 = sfence }
   0xc   :  { %s17_s19 = sld [smem:[#allocation3]]  ;;  %s100_s20 = sld [smem:[#allocation3 + $0x3]] }
   0xd   :  { %11 = vsyncpa [#allocation5], 0  ;;  %s101_s21 = sld [smem:[#allocation3 + $0x6]]  ;;  %s104_s22 = sld [smem:[#allocation3 + $0x1]]  ;;  %v14_v0 = vld [vmem:[%s217_s1] sm:$0x1] }
   0xe   :  { %s105_s23 = sld [smem:[#allocation3 + $0x4]]  ;;  %s106_s26 = sld [smem:[#allocation3 + $0x7]]  ;;  %v15_v1 = vld [vmem:[%s217_s1 + $0x1] sm:$0x1] }
   0xf   :  { %s109_s29 = sld [smem:[#allocation3 + $0x2]]  ;;  %s110_s0 = sld [smem:[#allocation3 + $0x5]] }
  0x10   :  { %s111_s30 = sld [smem:[#allocation3 + $0x8]]  ;;  %s103_s1 = sld [smem:[#allocation3 + $0x9]] }
  0x11   :  { %s99_s3 = sld [smem:[#allocation3 + $0xc]]  ;;  %s108_s4 = sld [smem:[#allocation3 + $0xa]] }
  0x12   :  { %v18_v2 = vstv %s17_s19  ;;  %v21_v3 = vstv %s100_s20  ;;  %s113_s5 = sld [smem:[#allocation3 + $0xb]]  ;;  %s170_s6 = smov [#allocation4]  }
  0x13   :  { %v19_v4 = vmul.f32 %v18_v2, %v14_v0  ;;  %v22_v5 = vmul.f32 %v21_v3, %v15_v1  ;;  %v25_v6 = vstv %s101_s21  ;;  %v39_v7 = vstv %s104_s22  ;;  %s91_s7 = sshll.u32 %s170_s6, 4  ;;  %s92_s7 = int_to_ptr.vmem [resolvable:$true] %s91_s7 }
  0x14   :  { %v42_v8 = vstv %s105_s23  ;;  %v40_v10 = vmul.f32 %v39_v7, %v14_v0  ;;  %v46_v12 = vstv %s106_s26  ;;  %s143_s8 = scalar_lea.vmem %s92_s7, 16  ;;  %s147_s9 = scalar_lea.vmem %s92_s7, 32 }
  0x15   :  { %v23_v9 = vadd.f32 %v22_v5, %v19_v4  ;;  %v43_v11 = vmul.f32 %v42_v8, %v15_v1  ;;  %v59_v13 = vstv %s109_s29  ;;  %v62_v14 = vstv %s110_s0  ;;  %p144_p3 = scmp.ne.s32.totalorder %s92_s7, %s143_s8  ;;  %p148_p4 = scmp.lt.s32.totalorder %s92_s7, %s92_s7 }
  0x16   :  { %v60_v17 = vmul.f32 %v59_v13, %v14_v0  ;;  %v63_v18 = vmul.f32 %v62_v14, %v15_v1  ;;  %v66_v19 = vstv %s111_s30  ;;  %v34_v32 = vstv %s103_s1  ;;  %p149_p5 = scmp.lt.s32.totalorder %s147_s9, %s143_s8 }
  0x17   :  { %v26_v15 = vadd.f32 %v25_v6, %v23_v9  ;;  %v44_v16 = vadd.f32 %v43_v11, %v40_v10  ;;  %v36_v34 = vstv %s99_s3  ;;  %v55_v35 = vstv %s108_s4 }
  0x18   :  { %v64_v22 = vadd.f32 %v63_v18, %v60_v17  ;;  %v75_v38 = vstv %s113_s5  ;;  %p150_p6 = por %p149_p5, %p148_p4 }
  0x19   :  { %v102_v20 = vmul.f32 -1.442695, %v26_v15  ;;  %v47_v21 = vadd.f32 %v46_v12, %v44_v16 }
  0x1a   :  { %v67_v24 = vadd.f32 %v66_v19, %v64_v22  ;;  %p151_p7 = pnand %p150_p6, %p144_p3 }
  0x1b   :  { %117 = vpow2.f32 %v102_v20  ;;  %v107_v23 = vmul.f32 -1.442695, %v47_v21 }
  0x1c   :  { %v112_v25 = vmul.f32 -1.442695, %v67_v24 }
  0x1d   :  { %119 = vpow2.f32 %v107_v23 }
  0x1e   :  { %121 = vpow2.f32 %v112_v25 }
  0x25   :  { %v118_v26 = vpop.eup %117 }
  0x26   :  { %v30_v27 = vadd.f32 1.0, %v118_v26 }
  0x27   :  { %v120_v28 = vpop.eup %119 }
  0x28   :  { %123 = vrcp.f32 %v30_v27  ;;  %v51_v29 = vadd.f32 1.0, %v120_v28  ;;  %v122_v30 = vpop.eup %121 }
  0x29   :  { %v71_v31 = vadd.f32 1.0, %v122_v30 }
  0x2a   :  { %125 = vrcp.f32 %v51_v29 }
  0x2b   :  { %127 = vrcp.f32 %v71_v31 }
  0x32   :  { %v124_v33 = vpop.eup %123 }
  0x33   :  { %v35_v36 = vmul.f32 %v124_v33, %v34_v32 }
  0x34   :  { %v126_v37 = vpop.eup %125 }
  0x35   :  { %v37_v39 = vadd.f32 %v36_v34, %v35_v36  ;;  %v56_v40 = vmul.f32 %v126_v37, %v55_v35  ;;  %v128_v41 = vpop.eup %127 }
  0x36   :  { %v76_v43 = vmul.f32 %v128_v41, %v75_v38 }
  0x37   :  { %v57_v42 = vadd.f32 %v56_v40, %v37_v39 }
  0x39   :  { %v77_v44 = vadd.f32 %v76_v43, %v57_v42 }
  0x3b   :  { %v114_v45 = vmul.f32 -1.442695, %v77_v44 }
  0x3d   :  { %129 = vpow2.f32 %v114_v45 }
  0x47   :  { %v130_v46 = vpop.eup %129 }
  0x48   :  { %v81_v47 = vadd.f32 1.0, %v130_v46 }
  0x4a   :  { %131 = vrcp.f32 %v81_v47 }
  0x54   :  { %v132_v48 = vpop.eup %131 }
  0x55   :  { %84 = vst [vmem:[#allocation4] sm:$0x1] %v132_v48 }
  0x56   :  { %154 = shalt.err (!%p151_p7)
}
  0x57   :  { %s155_s12 = scalar_lea.hbm %s218_s2, 16 }
  0x58   :  { %p156_p8 = scmp.ne.s32.totalorder %s218_s2, %s155_s12  ;;  %p159_p9 = scmp.lt.u32.totalorder %s155_s12, %s218_s2 }
  0x5a   :  { %p161_p10 = pnand %p159_p9, %p156_p8 }
  0x5c   :  { %164 = shalt.err (!%p161_p10)
}
  0x5d   :  { %94 = dma.vmem_to_hbm [thread:$0]  %s92_s7, 16, %s218_s2, [#allocation5]  }
  0x5e   :  { %167 = dma.done.wait [#allocation5], 16  }
  0x5f   :  { %168 = vsyncadd [#allocation5], 4294967280 }
  0x60   :  { %98 = vsyncpa [#allocation5], 1 }

</bundles_post_ra>
